<compile_context>
chip_gen: v5e
topology: v5e:2x2
jax: 0.10.0
libtpu: 0.0.40
codegen_flags: <defaults>
</compile_context>

<pallas_src>
import functools

import jax
import jax.numpy as jnp
from jax.experimental import pallas as pl
from jax.experimental.pallas import tpu as pltpu

K_TOP = 5  # SoftCE_TL.k


def _log_softmax(x):
    m = jnp.max(x, axis=-1, keepdims=True)
    s = x - m
    return s - jnp.log(jnp.sum(jnp.exp(s), axis=-1, keepdims=True))


def _soft_ce_tl_kernel(gamma_ref, cls_ref, tgt_ref, teach_ref, tok_ref, out_ref,
                       *, exact_ties=True):
    """One batch tile -> per-row combined loss gamma*lm + (1-gamma)*lt, (TB, 1)."""
    g = gamma_ref[0]  # scalar f32 from SMEM

    # ---- model branch first (keeps its (TB, C) temporaries' live ranges short) ----
    cls = cls_ref[...].astype(jnp.float32)
    tgt = tgt_ref[...].astype(jnp.float32)
    lm = -jnp.sum(tgt * _log_softmax(cls), axis=-1, keepdims=True)        # (TB, 1)

    # ---- teacher branch ----
    teach = teach_ref[...].astype(jnp.float32)
    TB, C = teach.shape

    # k-th largest value of teacher_preds per row (== min of top-k).
    # TODO(synk): assumes C >= K_TOP and finite teacher_preds (torch.topk would
    # raise / misbehave otherwise).
    neg_inf = jnp.float32(-jnp.inf)
    cur = teach
    max_teach = None
    kth = None
    if exact_ties:
        idx = jax.lax.broadcasted_iota(jnp.int32, (TB, C), 1)
    for step in range(K_TOP):
        kth = jnp.max(cur, axis=-1, keepdims=True)                        # (TB, 1)
        if step == 0:
            max_teach = kth
        if step < K_TOP - 1:  # last step only needs the max itself
            if exact_ties:
                # Tie-exact: remove exactly ONE occurrence of the current max,
                # matching torch.topk(...).min(-1) when duplicates exist.
                first_idx = jnp.min(jnp.where(cur == kth, idx, jnp.int32(C)),
                                    axis=-1, keepdims=True)
                cur = jnp.where(idx == first_idx, neg_inf, cur)
            else:
                # Fast path: drop all occurrences of the current max (only
                # differs from torch when exact duplicates land in the top-5).
                cur = jnp.where(cur == kth, neg_inf, cur)

    # Teacher soft label folded into the loss.  softmax is shift-invariant, so
    # reuse the step-0 row max instead of re-reducing over `mat`:
    #   maximum(max_teach, 0) >= max(mat), and the shift rescales e and sum(e)
    #   identically.
    mat = jnp.where(teach >= kth, teach, jnp.zeros_like(teach))
    mm = jnp.maximum(max_teach, jnp.float32(0.0))
    e = jnp.exp(mat - mm)
    se = jnp.sum(e, axis=-1, keepdims=True)

    tok = tok_ref[...].astype(jnp.float32)
    # Fused normalization: -sum(softmax(mat) * lsm_t) == -sum(e * lsm_t) / sum(e).
    lt = -jnp.sum(e * _log_softmax(tok), axis=-1, keepdims=True) * pl.reciprocal(se)

    out_ref[...] = g * lm + (1.0 - g) * lt


def _round_up(x, m):
    return ((x + m - 1) // m) * m


def _choose_block_rows(batch, num_classes, in_dtypes,
                       *, budget_bytes=12 * 1024 * 1024, max_rows=1024):
    """Largest batch tile (multiple of 8) whose real working set fits the budget.

    Counts the double-buffered input tiles at their HBM dtype, ~12 live
    (TB, C) f32 temporaries created by the body, and the lane-padded (TB, 1)
    output buffers -- not just the raw input tile bytes.
    """
    in_row = sum(jnp.dtype(d).itemsize for d in in_dtypes) * num_classes
    work_row = 12 * num_classes * 4
    out_row = 2 * 128 * 4                    # (TB,1) f32 pads to 128 lanes, x2 buffers
    tb = budget_bytes // (2 * in_row + work_row + out_row)
    tb = max(8, (tb // 8) * 8)
    tb = min(tb, max_rows)                   # per-step overhead amortized well before this
    tb = min(tb, _round_up(batch, 8))        # never (much) bigger than the batch
    # Keep >= 4 grid steps on large batches (v7x megacore + pipelining), but
    # don't shred tiny batches into overhead-dominated tiles.
    tb = min(tb, max(128, _round_up(-(-batch // 4), 8)))
    return int(tb)


def _vmem_limit_bytes():
    """Generation-aware scoped-VMEM limit (v7x: 64 MiB/TC physical vs 128 on v5e/v6e)."""
    try:
        cap = pltpu.get_tpu_info().vmem_capacity_bytes
    except Exception:  # pragma: no cover - interpret mode / query unavailable
        cap = 64 * 1024 * 1024
    return int(min(64 * 1024 * 1024, max(32 * 1024 * 1024, cap // 2)))


def soft_ce_tl(cls_score, target, token_preds, teacher_preds, gamma,
               *, block_rows=None, exact_ties=True):
    """Pallas implementation of SoftCE_TL.forward. Returns a scalar float32."""
    assert cls_score.ndim == 2 and cls_score.shape == target.shape
    assert token_preds.ndim == 2 and token_preds.shape == teacher_preds.shape
    B, C = cls_score.shape
    assert teacher_preds.shape == (B, C)
    assert C >= K_TOP

    in_dtypes = (cls_score.dtype, target.dtype, teacher_preds.dtype,
                 token_preds.dtype)
    tb = block_rows if block_rows is not None else _choose_block_rows(B, C, in_dtypes)
    assert tb % 8 == 0 and tb > 0

    num_tiles = pl.cdiv(B, tb)

    in_bytes = sum(B * C * jnp.dtype(d).itemsize for d in in_dtypes)
    cost = pl.CostEstimate(
        flops=int(40 * B * C),
        transcendentals=int(3 * B * C),
        bytes_accessed=int(in_bytes + B * 4 + 4),
    )

    tile_spec = pl.BlockSpec((tb, C), lambda i: (i, 0))
    gamma_arr = jnp.asarray(gamma, dtype=jnp.float32).reshape((1,))

    per_row = pl.pallas_call(
        functools.partial(_soft_ce_tl_kernel, exact_ties=exact_ties),
        grid=(num_tiles,),
        in_specs=[
            pl.BlockSpec(memory_space=pltpu.MemorySpace.SMEM),  # gamma scalar
            tile_spec, tile_spec, tile_spec, tile_spec,
        ],
        out_specs=pl.BlockSpec((tb, 1), lambda i: (i, 0)),
        out_shape=jax.ShapeDtypeStruct((B, 1), jnp.float32),
        compiler_params=pltpu.CompilerParams(
            dimension_semantics=("parallel",),
            vmem_limit_bytes=_vmem_limit_bytes(),
        ),
        cost_estimate=cost,
    )(gamma_arr, cls_score, target, teacher_preds, token_preds)

    # Free XLA epilogue: the output has exactly B valid rows -> just the mean.
    return jnp.sum(per_row[:, 0]) * jnp.float32(1.0 / B)


# ---------------- pure-JAX reference (mirrors the PyTorch code) ----------------
def _soft_ce_ref(logits, label):
    lsm = jax.nn.log_softmax(logits.astype(jnp.float32), axis=1)
    return jnp.mean(-jnp.sum(label.astype(jnp.float32) * lsm, axis=1))


def soft_ce_tl_ref(cls_score, target, token_preds, teacher_preds, gamma):
    loss_model = _soft_ce_ref(cls_score, target)
    tp = teacher_preds.astype(jnp.float32)
    a_min = jnp.min(jax.lax.top_k(tp, K_TOP)[0], axis=-1, keepdims=True)
    mat = jnp.where(tp >= a_min, tp, jnp.zeros_like(tp))
    soft_label = jax.nn.softmax(mat, axis=-1)
    loss_teacher = _soft_ce_ref(token_preds, soft_label)
    gamma = jnp.float32(gamma)
    return gamma * loss_model + (1.0 - gamma) * loss_teacher


def _run_case(key, B, C, gamma, block_rows=None, dtype=jnp.float32, tol=1e-4):
    k1, k2, k3, k4 = jax.random.split(key, 4)
    cls_score = jax.random.normal(k1, (B, C), dtype=jnp.float32).astype(dtype)
    target = jax.nn.softmax(jax.random.normal(k2, (B, C)), axis=-1).astype(dtype)
    token_preds = jax.random.normal(k3, (B, C), dtype=jnp.float32).astype(dtype)
    teacher_preds = jax.random.normal(k4, (B, C), dtype=jnp.float32).astype(dtype)

    loss = soft_ce_tl(cls_score, target, token_preds, teacher_preds, gamma,
                      block_rows=block_rows)
    loss = jax.block_until_ready(loss)
    ref = soft_ce_tl_ref(cls_score, target, token_preds, teacher_preds, gamma)
    assert jnp.allclose(loss, ref, rtol=tol, atol=tol), (B, C, dtype, loss, ref)


if __name__ == "__main__":
    key = jax.random.PRNGKey(0)
    k_a, k_b, k_c, k_d = jax.random.split(key, 4)

    # single tile, divisible batch
    _run_case(k_a, B=8, C=128, gamma=0.7)
    # batch not a multiple of the tile size: ragged last block, no padding copies
    _run_case(k_b, B=12, C=128, gamma=0.3, block_rows=8)
    # several tiles on the parallel batch axis (pipelining / megacore path)
    _run_case(k_c, B=24, C=128, gamma=0.5, block_rows=8)
    # bf16 inputs (halved HBM traffic; in-kernel f32 upcast)
    _run_case(k_d, B=16, C=128, gamma=0.6, dtype=jnp.bfloat16, tol=1e-3)

    print("KERNEL_OK")
</pallas_src>

<mosaic_0001>
module attributes {stable_mosaic.version = 11 : i64} {
  func.func @_soft_ce_tl_kernel(%arg0: i32, %arg1: memref<1xf32, #tpu.memory_space<smem>>, %arg2: memref<8x128xf32, #tpu.memory_space<vmem>>, %arg3: memref<8x128xf32, #tpu.memory_space<vmem>>, %arg4: memref<8x128xf32, #tpu.memory_space<vmem>>, %arg5: memref<8x128xf32, #tpu.memory_space<vmem>>, %arg6: memref<8x1xf32, #tpu.memory_space<vmem>>) attributes {dimension_semantics = [#tpu.dimension_semantics<parallel>], iteration_bounds = array<i64: 1>, scalar_prefetch = 0 : i64, scratch_operands = 0 : i64, tpu.core_type = #tpu.core_type<tc>, window_params = [{transform_indices = @transform_0, window_bounds = array<i64: 1>}, {transform_indices = @transform_1, window_bounds = array<i64: 8, 128>}, {transform_indices = @transform_2, window_bounds = array<i64: 8, 128>}, {transform_indices = @transform_3, window_bounds = array<i64: 8, 128>}, {transform_indices = @transform_4, window_bounds = array<i64: 8, 128>}, {transform_indices = @transform_5, window_bounds = array<i64: 8, 1>}]} {
    %c0 = arith.constant 0 : index
    %0 = memref.load %arg1[%c0] : memref<1xf32, #tpu.memory_space<smem>>
    %c0_0 = arith.constant 0 : index
    %c0_1 = arith.constant 0 : index
    %1 = vector.load %arg2[%c0_0, %c0_1] : memref<8x128xf32, #tpu.memory_space<vmem>>, vector<8x128xf32>
    %c0_2 = arith.constant 0 : index
    %c0_3 = arith.constant 0 : index
    %2 = vector.load %arg3[%c0_2, %c0_3] : memref<8x128xf32, #tpu.memory_space<vmem>>, vector<8x128xf32>
    %cst = arith.constant dense<0xFF800000> : vector<8xf32>
    %3 = vector.multi_reduction <maximumf>, %1, %cst [1] : vector<8x128xf32> to vector<8xf32>
    %4 = vector.shape_cast %3 : vector<8xf32> to vector<8x1xf32>
    %5 = vector.broadcast %4 : vector<8x1xf32> to vector<8x128xf32>
    %6 = arith.subf %1, %5 : vector<8x128xf32>
    %7 = math.exp %6 : vector<8x128xf32>
    %cst_4 = arith.constant dense<0.000000e+00> : vector<8xf32>
    %8 = vector.multi_reduction <add>, %7, %cst_4 [1] : vector<8x128xf32> to vector<8xf32>
    %9 = vector.shape_cast %8 : vector<8xf32> to vector<8x1xf32>
    %10 = math.log %9 : vector<8x1xf32>
    %11 = vector.broadcast %10 : vector<8x1xf32> to vector<8x128xf32>
    %12 = arith.subf %6, %11 : vector<8x128xf32>
    %13 = arith.mulf %2, %12 : vector<8x128xf32>
    %cst_5 = arith.constant dense<0.000000e+00> : vector<8xf32>
    %14 = vector.multi_reduction <add>, %13, %cst_5 [1] : vector<8x128xf32> to vector<8xf32>
    %15 = vector.shape_cast %14 : vector<8xf32> to vector<8x1xf32>
    %cst_6 = arith.constant 0.000000e+00 : f32
    %16 = vector.broadcast %cst_6 : f32 to vector<8x1xf32>
    %17 = arith.subf %16, %15 : vector<8x1xf32>
    %c0_7 = arith.constant 0 : index
    %c0_8 = arith.constant 0 : index
    %18 = vector.load %arg4[%c0_7, %c0_8] : memref<8x128xf32, #tpu.memory_space<vmem>>, vector<8x128xf32>
    %19 = tpu.iota {dimensions = array<i32: 1>} : vector<8x128xi32>
    %cst_9 = arith.constant dense<0xFF800000> : vector<8xf32>
    %20 = vector.multi_reduction <maximumf>, %18, %cst_9 [1] : vector<8x128xf32> to vector<8xf32>
    %21 = vector.shape_cast %20 : vector<8xf32> to vector<8x1xf32>
    %22 = vector.broadcast %21 : vector<8x1xf32> to vector<8x128xf32>
    %23 = arith.cmpf oeq, %18, %22 : vector<8x128xf32>
    %c128_i32 = arith.constant 128 : i32
    %24 = vector.broadcast %c128_i32 : i32 to vector<8x128xi32>
    %25 = arith.select %23, %19, %24 : vector<8x128xi1>, vector<8x128xi32>
    %cst_10 = arith.constant dense<2147483647> : vector<8xi32>
    %26 = vector.multi_reduction <minsi>, %25, %cst_10 [1] : vector<8x128xi32> to vector<8xi32>
    %27 = vector.shape_cast %26 : vector<8xi32> to vector<8x1xi32>
    %28 = vector.broadcast %27 : vector<8x1xi32> to vector<8x128xi32>
    %29 = arith.cmpi eq, %19, %28 : vector<8x128xi32>
    %cst_11 = arith.constant 0xFF800000 : f32
    %30 = vector.broadcast %cst_11 : f32 to vector<8x128xf32>
    %31 = arith.select %29, %30, %18 : vector<8x128xi1>, vector<8x128xf32>
    %cst_12 = arith.constant dense<0xFF800000> : vector<8xf32>
    %32 = vector.multi_reduction <maximumf>, %31, %cst_12 [1] : vector<8x128xf32> to vector<8xf32>
    %33 = vector.shape_cast %32 : vector<8xf32> to vector<8x1xf32>
    %34 = vector.broadcast %33 : vector<8x1xf32> to vector<8x128xf32>
    %35 = arith.cmpf oeq, %31, %34 : vector<8x128xf32>
    %c128_i32_13 = arith.constant 128 : i32
    %36 = vector.broadcast %c128_i32_13 : i32 to vector<8x128xi32>
    %37 = arith.select %35, %19, %36 : vector<8x128xi1>, vector<8x128xi32>
    %cst_14 = arith.constant dense<2147483647> : vector<8xi32>
    %38 = vector.multi_reduction <minsi>, %37, %cst_14 [1] : vector<8x128xi32> to vector<8xi32>
    %39 = vector.shape_cast %38 : vector<8xi32> to vector<8x1xi32>
    %40 = vector.broadcast %39 : vector<8x1xi32> to vector<8x128xi32>
    %41 = arith.cmpi eq, %19, %40 : vector<8x128xi32>
    %cst_15 = arith.constant 0xFF800000 : f32
    %42 = vector.broadcast %cst_15 : f32 to vector<8x128xf32>
    %43 = arith.select %41, %42, %31 : vector<8x128xi1>, vector<8x128xf32>
    %cst_16 = arith.constant dense<0xFF800000> : vector<8xf32>
    %44 = vector.multi_reduction <maximumf>, %43, %cst_16 [1] : vector<8x128xf32> to vector<8xf32>
    %45 = vector.shape_cast %44 : vector<8xf32> to vector<8x1xf32>
    %46 = vector.broadcast %45 : vector<8x1xf32> to vector<8x128xf32>
    %47 = arith.cmpf oeq, %43, %46 : vector<8x128xf32>
    %c128_i32_17 = arith.constant 128 : i32
    %48 = vector.broadcast %c128_i32_17 : i32 to vector<8x128xi32>
    %49 = arith.select %47, %19, %48 : vector<8x128xi1>, vector<8x128xi32>
    %cst_18 = arith.constant dense<2147483647> : vector<8xi32>
    %50 = vector.multi_reduction <minsi>, %49, %cst_18 [1] : vector<8x128xi32> to vector<8xi32>
    %51 = vector.shape_cast %50 : vector<8xi32> to vector<8x1xi32>
    %52 = vector.broadcast %51 : vector<8x1xi32> to vector<8x128xi32>
    %53 = arith.cmpi eq, %19, %52 : vector<8x128xi32>
    %cst_19 = arith.constant 0xFF800000 : f32
    %54 = vector.broadcast %cst_19 : f32 to vector<8x128xf32>
    %55 = arith.select %53, %54, %43 : vector<8x128xi1>, vector<8x128xf32>
    %cst_20 = arith.constant dense<0xFF800000> : vector<8xf32>
    %56 = vector.multi_reduction <maximumf>, %55, %cst_20 [1] : vector<8x128xf32> to vector<8xf32>
    %57 = vector.shape_cast %56 : vector<8xf32> to vector<8x1xf32>
    %58 = vector.broadcast %57 : vector<8x1xf32> to vector<8x128xf32>
    %59 = arith.cmpf oeq, %55, %58 : vector<8x128xf32>
    %c128_i32_21 = arith.constant 128 : i32
    %60 = vector.broadcast %c128_i32_21 : i32 to vector<8x128xi32>
    %61 = arith.select %59, %19, %60 : vector<8x128xi1>, vector<8x128xi32>
    %cst_22 = arith.constant dense<2147483647> : vector<8xi32>
    %62 = vector.multi_reduction <minsi>, %61, %cst_22 [1] : vector<8x128xi32> to vector<8xi32>
    %63 = vector.shape_cast %62 : vector<8xi32> to vector<8x1xi32>
    %64 = vector.broadcast %63 : vector<8x1xi32> to vector<8x128xi32>
    %65 = arith.cmpi eq, %19, %64 : vector<8x128xi32>
    %cst_23 = arith.constant 0xFF800000 : f32
    %66 = vector.broadcast %cst_23 : f32 to vector<8x128xf32>
    %67 = arith.select %65, %66, %55 : vector<8x128xi1>, vector<8x128xf32>
    %cst_24 = arith.constant dense<0xFF800000> : vector<8xf32>
    %68 = vector.multi_reduction <maximumf>, %67, %cst_24 [1] : vector<8x128xf32> to vector<8xf32>
    %69 = vector.shape_cast %68 : vector<8xf32> to vector<8x1xf32>
    %70 = vector.broadcast %69 : vector<8x1xf32> to vector<8x128xf32>
    %71 = arith.cmpf oge, %18, %70 : vector<8x128xf32>
    %cst_25 = arith.constant 0.000000e+00 : f32
    %72 = vector.broadcast %cst_25 : f32 to vector<8x128xf32>
    %73 = arith.select %71, %18, %72 : vector<8x128xi1>, vector<8x128xf32>
    %cst_26 = arith.constant 0.000000e+00 : f32
    %74 = vector.broadcast %cst_26 : f32 to vector<8x1xf32>
    %75 = arith.maximumf %21, %74 : vector<8x1xf32>
    %76 = vector.broadcast %75 : vector<8x1xf32> to vector<8x128xf32>
    %77 = arith.subf %73, %76 : vector<8x128xf32>
    %78 = math.exp %77 : vector<8x128xf32>
    %cst_27 = arith.constant dense<0.000000e+00> : vector<8xf32>
    %79 = vector.multi_reduction <add>, %78, %cst_27 [1] : vector<8x128xf32> to vector<8xf32>
    %80 = vector.shape_cast %79 : vector<8xf32> to vector<8x1xf32>
    %c0_28 = arith.constant 0 : index
    %c0_29 = arith.constant 0 : index
    %81 = vector.load %arg5[%c0_28, %c0_29] : memref<8x128xf32, #tpu.memory_space<vmem>>, vector<8x128xf32>
    %cst_30 = arith.constant dense<0xFF800000> : vector<8xf32>
    %82 = vector.multi_reduction <maximumf>, %81, %cst_30 [1] : vector<8x128xf32> to vector<8xf32>
    %83 = vector.shape_cast %82 : vector<8xf32> to vector<8x1xf32>
    %84 = vector.broadcast %83 : vector<8x1xf32> to vector<8x128xf32>
    %85 = arith.subf %81, %84 : vector<8x128xf32>
    %86 = math.exp %85 : vector<8x128xf32>
    %cst_31 = arith.constant dense<0.000000e+00> : vector<8xf32>
    %87 = vector.multi_reduction <add>, %86, %cst_31 [1] : vector<8x128xf32> to vector<8xf32>
    %88 = vector.shape_cast %87 : vector<8xf32> to vector<8x1xf32>
    %89 = math.log %88 : vector<8x1xf32>
    %90 = vector.broadcast %89 : vector<8x1xf32> to vector<8x128xf32>
    %91 = arith.subf %85, %90 : vector<8x128xf32>
    %92 = arith.mulf %78, %91 : vector<8x128xf32>
    %cst_32 = arith.constant dense<0.000000e+00> : vector<8xf32>
    %93 = vector.multi_reduction <add>, %92, %cst_32 [1] : vector<8x128xf32> to vector<8xf32>
    %94 = vector.shape_cast %93 : vector<8xf32> to vector<8x1xf32>
    %cst_33 = arith.constant 0.000000e+00 : f32
    %95 = vector.broadcast %cst_33 : f32 to vector<8x1xf32>
    %96 = arith.subf %95, %94 : vector<8x1xf32>
    %97 = tpu.reciprocal %80 : vector<8x1xf32> -> vector<8x1xf32>
    %98 = arith.mulf %96, %97 : vector<8x1xf32>
    %99 = vector.broadcast %0 : f32 to vector<8x1xf32>
    %100 = arith.mulf %99, %17 : vector<8x1xf32>
    %cst_34 = arith.constant 1.000000e+00 : f32
    %101 = arith.subf %cst_34, %0 : f32
    %102 = vector.broadcast %101 : f32 to vector<8x1xf32>
    %103 = arith.mulf %102, %98 : vector<8x1xf32>
    %104 = arith.addf %100, %103 : vector<8x1xf32>
    %c0_35 = arith.constant 0 : index
    %c0_36 = arith.constant 0 : index
    %105 = vector.load %arg6[%c0_35, %c0_36] : memref<8x1xf32, #tpu.memory_space<vmem>>, vector<8x1xf32>
    tpu.vector_store %arg6[%c0_35, %c0_36], %104 {strides = array<i32>} : memref<8x1xf32, #tpu.memory_space<vmem>>, vector<8x1xf32>,
    return
  }
  func.func @transform_0(%arg0: i32) -> i32 {
    %c0_i32 = arith.constant 0 : i32
    %c0_i32_0 = arith.constant 0 : i32
    return %c0_i32 : i32
  }
  func.func @transform_1(%arg0: i32) -> (i32, i32) {
    %c0_i32 = arith.constant 0 : i32
    %c0_i32_0 = arith.constant 0 : i32
    return %arg0, %c0_i32 : i32, i32
  }
  func.func @transform_2(%arg0: i32) -> (i32, i32) {
    %c0_i32 = arith.constant 0 : i32
    %c0_i32_0 = arith.constant 0 : i32
    return %arg0, %c0_i32 : i32, i32
  }
  func.func @transform_3(%arg0: i32) -> (i32, i32) {
    %c0_i32 = arith.constant 0 : i32
    %c0_i32_0 = arith.constant 0 : i32
    return %arg0, %c0_i32 : i32, i32
  }
  func.func @transform_4(%arg0: i32) -> (i32, i32) {
    %c0_i32 = arith.constant 0 : i32
    %c0_i32_0 = arith.constant 0 : i32
    return %arg0, %c0_i32 : i32, i32
  }
  func.func @transform_5(%arg0: i32) -> (i32, i32) {
    %c0_i32 = arith.constant 0 : i32
    %c0_i32_0 = arith.constant 0 : i32
    return %arg0, %c0_i32 : i32, i32
  }
}

</mosaic_0001>

<bundles_post_ra>
// kernel: tpu_custom_call.1
= control target key start
LH: loop header
LB: loop body
LE: loop exit
PB: predicated region body
PF: predicated region fallthrough
CT: control target
= control target key end

     0   :  { %11 = vsyncpa [#allocation4], 0  ;;  %s425_s0 = inlined_call_operand.<no memory space> [shape: f32[1], index: 0, kind: input, shape index: {}]   ;;  %s426_s1 = inlined_call_operand.hbm [shape: f32[8,128], index: 1, kind: input, shape index: {}]   ;;  %s427_s2 = inlined_call_operand.hbm [shape: f32[8,128], index: 2, kind: input, shape index: {}]   ;;  %s428_s3 = inlined_call_operand.hbm [shape: f32[8,128], index: 3, kind: input, shape index: {}]   ;;  %s429_s4 = inlined_call_operand.hbm [shape: f32[8,128], index: 4, kind: input, shape index: {}]   ;;  %s430_s5 = inlined_call_operand.vmem [shape: f32[8,1], index: 5, kind: output, shape index: {}]  }
   0x1   :  { %12 = vsyncpa [#allocation6], 0  ;;  %s32_s20 = sshll.u32 %s427_s2, 4  ;;  %s33_s20 = int_to_ptr.hbm [resolvable:$true] %s32_s20 }
   0x2   :  { %13 = vsyncpa [#allocation9], 0  ;;  %s349_s21 = smov [#allocation5]   ;;  %s21_s25 = sshll.u32 %s426_s1, 4  ;;  %s22_s25 = int_to_ptr.hbm [resolvable:$true] %s21_s25 }
   0x3   :  { %s34_s22 = sshll.u32 %s349_s21, 4  ;;  %s350_s26 = smov [#allocation3]   ;;  %s35_s22 = int_to_ptr.vmem [resolvable:$true] %s34_s22 }
   0x4   :  { %37 = dma.hbm_to_vmem [thread:$0]  %s33_s20, 128, %s35_s22, [#allocation6]  }
   0x5   :  { %s23_s27 = sshll.u32 %s350_s26, 4  ;;  %s43_s30 = sshll.u32 %s428_s3, 4  ;;  %s24_s27 = int_to_ptr.vmem [resolvable:$true] %s23_s27  ;;  %s44_s30 = int_to_ptr.hbm [resolvable:$true] %s43_s30 }
   0x6   :  { %26 = dma.hbm_to_vmem [thread:$0]  %s22_s25, 128, %s24_s27, [#allocation4]  }
   0x7   :  { %s54_s7 = sshll.u32 %s429_s4, 4  ;;  %s351_s8 = smov [#allocation7]   ;;  %s55_s7 = int_to_ptr.hbm [resolvable:$true] %s54_s7 }
   0x8   :  { %s45_s9 = sshll.u32 %s351_s8, 4  ;;  %s352_s1 = smov [#allocation8]   ;;  %s46_s9 = int_to_ptr.vmem [resolvable:$true] %s45_s9 }
   0x9   :  { %48 = dma.hbm_to_vmem [thread:$0]  %s44_s30, 128, %s46_s9, [#allocation6]  }
   0xa   :  { %s56_s10 = sshll.u32 %s352_s1, 4  ;;  %s57_s10 = int_to_ptr.vmem [resolvable:$true] %s56_s10 }
   0xb   :  { %59 = dma.hbm_to_vmem [thread:$0]  %s55_s7, 128, %s57_s10, [#allocation9]  }
   0xc   :  { %343 = dma.done.wait [#allocation4], 128  }
   0xd   :  { %344 = vsyncadd [#allocation4], 4294967168 }
   0xe   :  { %345 = dma.done.wait [#allocation6], 256  }
   0xf   :  { %346 = vsyncadd [#allocation6], 4294967040 }
  0x10   :  { %347 = dma.done.wait [#allocation9], 128  }
  0x11   :  { %348 = vsyncadd [#allocation9], 4294967168  ;;  %v395_v0 = vld [vmem:[#allocation7] sm:$0xff]  ;;  %v94_v1 = vlaneseq  ;;  %v186_v45 = vld [vmem:[#allocation8] sm:$0xff]  ;;  %s218_s11 = ssub.f32 1.0, %s425_s0 }
  0x12   :  { %96 = vmax.xlane.f32.xlu0 %v395_v0  ;;  %v77_v50 = vld [vmem:[#allocation3] sm:$0xff] }
  0x13   :  { %v398_v2 = vand.u32 127, %v94_v1 }
  0x85   :  { %v400_v3 = vpop.xlane.xlu0 %96 }
  0x86   :  { %vm98_vm0 = vcmp.eq.f32.partialorder %v395_v0, %v400_v3 }
  0x87   :  { %v99_v4 = vsel %vm98_vm0, %v398_v2, 128 }
  0x88   :  { %v101_v5 = vshra.s32 %v99_v4, 16  ;;  %v100_v7 = vand.u32 65535, %v99_v4 }
  0x8a   :  { %v103_v6 = vcvt.s32.f32 %v101_v5  ;;  %v102_v9 = vcvt.s32.f32 %v100_v7 }
  0x8c   :  { %104 = vmin.xlane.f32.xlu0 %v103_v6 }
  0xff   :  { %v105_v8 = vpop.xlane.xlu0 %104 }
 0x100   :  { %vm106_vm1 = vcmp.eq.f32.partialorder %v103_v6, %v105_v8  ;;  %v111_v11 = vcvt.f32.s32 %v105_v8 }
 0x101   :  { %v107_v10 = vsel %vm106_vm1, %v102_v9, inf  ;;  %vm222_vm1 = vcmask 7168  }
 0x102   :  { %108 = vmin.xlane.f32.xlu1 %v107_v10  ;;  %v112_v13 = vshll.u32 %v111_v11, 16  ;;  %v78_v11 = vld [vmem:[#allocation5] sm:$0xff] }
 0x175   :  { %v109_v12 = vpop.xlane.xlu1 %108 }
 0x176   :  { %v110_v14 = vcvt.f32.s32 %v109_v12 }
 0x178   :  { %v113_v15 = vadd.s32 %v112_v13, %v110_v14 }
 0x17a   :  { %vm114_vm2 = vcmp.eq.s32.totalorder %v398_v2, %v113_v15 }
 0x17b   :  { %v115_v16 = vsel %vm114_vm2, -inf, %v395_v0 }
 0x17c   :  { %116 = vmax.xlane.f32.xlu1 %v115_v16 }
 0x1ef   :  { %v117_v17 = vpop.xlane.xlu1 %116 }
 0x1f0   :  { %vm118_vm3 = vcmp.eq.f32.partialorder %v115_v16, %v117_v17 }
 0x1f1   :  { %v119_v18 = vsel %vm118_vm3, %v398_v2, 128 }
 0x1f2   :  { %v121_v19 = vshra.s32 %v119_v18, 16  ;;  %v120_v21 = vand.u32 65535, %v119_v18 }
 0x1f4   :  { %v123_v20 = vcvt.s32.f32 %v121_v19  ;;  %v122_v23 = vcvt.s32.f32 %v120_v21 }
 0x1f6   :  { %124 = vmin.xlane.f32.xlu2 %v123_v20 }
 0x269   :  { %v125_v22 = vpop.xlane.xlu2 %124 }
 0x26a   :  { %vm126_vm4 = vcmp.eq.f32.partialorder %v123_v20, %v125_v22  ;;  %v131_v25 = vcvt.f32.s32 %v125_v22 }
 0x26b   :  { %v127_v24 = vsel %vm126_vm4, %v122_v23, inf }
 0x26c   :  { %128 = vmin.xlane.f32.xlu2 %v127_v24  ;;  %v132_v27 = vshll.u32 %v131_v25, 16 }
 0x2df   :  { %v129_v26 = vpop.xlane.xlu2 %128 }
 0x2e0   :  { %v130_v28 = vcvt.f32.s32 %v129_v26 }
 0x2e2   :  { %v133_v29 = vadd.s32 %v132_v27, %v130_v28 }
 0x2e4   :  { %vm134_vm5 = vcmp.eq.s32.totalorder %v398_v2, %v133_v29 }
 0x2e5   :  { %v135_v30 = vsel %vm134_vm5, -inf, %v115_v16  ;;  %v180_v16 = vmax.f32 %v400_v3, 0.0 }
 0x2e6   :  { %136 = vmax.xlane.f32.xlu0 %v135_v30 }
 0x359   :  { %v137_v31 = vpop.xlane.xlu0 %136 }
 0x35a   :  { %vm138_vm6 = vcmp.eq.f32.partialorder %v135_v30, %v137_v31 }
 0x35b   :  { %v139_v32 = vsel %vm138_vm6, %v398_v2, 128 }
 0x35c   :  { %v141_v33 = vshra.s32 %v139_v32, 16  ;;  %v140_v35 = vand.u32 65535, %v139_v32 }
 0x35e   :  { %v143_v34 = vcvt.s32.f32 %v141_v33  ;;  %v142_v37 = vcvt.s32.f32 %v140_v35 }
 0x360   :  { %144 = vmin.xlane.f32.xlu1 %v143_v34 }
 0x3d3   :  { %v145_v36 = vpop.xlane.xlu1 %144 }
 0x3d4   :  { %vm146_vm7 = vcmp.eq.f32.partialorder %v143_v34, %v145_v36  ;;  %v151_v39 = vcvt.f32.s32 %v145_v36  ;;  %v216_v36 = vstv %s425_s0 }
 0x3d5   :  { %v147_v38 = vsel %vm146_vm7, %v142_v37, inf }
 0x3d6   :  { %148 = vmin.xlane.f32.xlu2 %v147_v38  ;;  %v152_v41 = vshll.u32 %v151_v39, 16  ;;  %v219_v38 = vstv %s218_s11 }
 0x449   :  { %v149_v40 = vpop.xlane.xlu2 %148 }
 0x44a   :  { %v150_v42 = vcvt.f32.s32 %v149_v40 }
 0x44c   :  { %v153_v43 = vadd.s32 %v152_v41, %v150_v42 }
 0x44e   :  { %vm154_vm8 = vcmp.eq.s32.totalorder %v398_v2, %v153_v43 }
 0x44f   :  { %v155_v44 = vsel %vm154_vm8, -inf, %v135_v30 }
 0x450   :  { %156 = vmax.xlane.f32.xlu0 %v155_v44 }
 0x458   :  { %187 = vmax.xlane.f32.xlu0 %v186_v45 }
 0x4c3   :  { %v157_v46 = vpop.xlane.xlu0 %156 }
 0x4c4   :  { %vm158_vm9 = vcmp.eq.f32.partialorder %v155_v44, %v157_v46 }
 0x4c5   :  { %v159_v47 = vsel %vm158_vm9, %v398_v2, 128 }
 0x4c6   :  { %v161_v48 = vshra.s32 %v159_v47, 16  ;;  %v160_v55 = vand.u32 65535, %v159_v47 }
 0x4c8   :  { %v163_v49 = vcvt.s32.f32 %v161_v48  ;;  %v162_v57 = vcvt.s32.f32 %v160_v55 }
 0x4ca   :  { %164 = vmin.xlane.f32.xlu1 %v163_v49 }
 0x4cb   :  { %v188_v51 = vpop.xlane.xlu0 %187 }
 0x4cc   :  { %v189_v52 = vsub.f32 %v186_v45, %v188_v51 }
 0x4ce   :  { %v190_v53 = vmul.f32 1.442695, %v189_v52 }
 0x4d0   :  { %235 = vpow2.f32 %v190_v53 }
 0x4d2   :  { %79 = vmax.xlane.f32.xlu1 %v77_v50 }
 0x4d6   :  { %v236_v54 = vpop.eup %235 }
 0x4d7   :  { %192 = vadd.xlane.f32.xlu0 %v236_v54 }
 0x53d   :  { %v165_v56 = vpop.xlane.xlu1 %164 }
 0x53e   :  { %vm166_vm10 = vcmp.eq.f32.partialorder %v163_v49, %v165_v56  ;;  %v171_v63 = vcvt.f32.s32 %v165_v56 }
 0x53f   :  { %v167_v58 = vsel %vm166_vm10, %v162_v57, inf }
 0x540   :  { %168 = vmin.xlane.f32.xlu2 %v167_v58  ;;  %v172_v4 = vshll.u32 %v171_v63, 16 }
 0x545   :  { %v80_v59 = vpop.xlane.xlu1 %79 }
 0x546   :  { %v81_v60 = vsub.f32 %v77_v50, %v80_v59 }
 0x548   :  { %v82_v61 = vmul.f32 1.442695, %v81_v60 }
 0x54a   :  { %237 = vpow2.f32 %v82_v61  ;;  %v193_v14 = vpop.xlane.xlu0 %192 }
 0x550   :  { %v238_v62 = vpop.eup %237 }
 0x551   :  { %84 = vadd.xlane.f32.xlu1 %v238_v62 }
 0x5b3   :  { %v169_v1 = vpop.xlane.xlu2 %168 }
 0x5b4   :  { %v170_v5 = vcvt.f32.s32 %v169_v1 }
 0x5b6   :  { %v173_v6 = vadd.s32 %v172_v4, %v170_v5 }
 0x5b8   :  { %vm174_vm11 = vcmp.eq.s32.totalorder %v398_v2, %v173_v6 }
 0x5b9   :  { %v175_v7 = vsel %vm174_vm11, -inf, %v155_v44 }
 0x5ba   :  { %176 = vmax.xlane.f32.xlu2 %v175_v7 }
 0x5c4   :  { %v85_v8 = vpop.xlane.xlu1 %84 }
 0x5c5   :  { %239 = vlog2.f32 %v85_v8 }
 0x5c6   :  { %241 = vlog2.f32 %v193_v14 }
 0x5cb   :  { %v240_v9 = vpop.eup %239 }
 0x5cc   :  { %v87_v10 = vmul.f32 0.6931472, %v240_v9  ;;  %v242_v18 = vpop.eup %241 }
 0x5cd   :  { %v195_v20 = vmul.f32 0.6931472, %v242_v18 }
 0x5ce   :  { %v88_v12 = vsub.f32 %v81_v60, %v87_v10 }
 0x5cf   :  { %v196_v21 = vsub.f32 %v189_v52, %v195_v20 }
 0x5d0   :  { %v89_v13 = vmul.f32 %v88_v12, %v78_v11 }
 0x5d2   :  { %90 = vadd.xlane.f32.xlu1 %v89_v13 }
 0x62d   :  { %v177_v15 = vpop.xlane.xlu2 %176 }
 0x62e   :  { %vm178_vm12 = vcmp.ge.f32.partialorder %v395_v0, %v177_v15 }
 0x62f   :  { %v179_v17 = vsel %vm178_vm12, %v395_v0, 0.0 }
 0x630   :  { %v181_v2 = vsub.f32 %v179_v17, %v180_v16 }
 0x632   :  { %v182_v19 = vmul.f32 1.442695, %v181_v2 }
 0x634   :  { %243 = vpow2.f32 %v182_v19 }
 0x63a   :  { %v244_v22 = vpop.eup %243 }
 0x63b   :  { %184 = vadd.xlane.f32.xlu2 %v244_v22  ;;  %v197_v23 = vmul.f32 %v244_v22, %v196_v21 }
 0x63d   :  { %198 = vadd.xlane.f32.xlu0 %v197_v23 }
 0x645   :  { %v91_v0 = vpop.xlane.xlu1 %90 }
 0x646   :  { %v92_v33 = vsub.f32 0.0, %v91_v0 }
 0x648   :  { %v217_v40 = vmul.f32 %v216_v36, %v92_v33 }
 0x6ae   :  { %v185_v24 = vpop.xlane.xlu2 %184 }
 0x6af   :  { %245 = vrcp.f32 %v185_v24  ;;  %v212_v3 = vand.u32 2147483648, %v185_v24  ;;  %v210_v29 = vand.u32 2147483647, %v185_v24  ;;  %vm206_vm14 = vweird.f32 %v185_v24 }
 0x6b0   :  { %v199_v30 = vpop.xlane.xlu0 %198 }
 0x6b1   :  { %v213_v32 = vor.u32 1.1754944e-38, %v212_v3  ;;  %vm211_vm0 = vcmp.eq.f32.partialorder %v210_v29, 8.507059e+37  ;;  %v200_v35 = vsub.f32 0.0, %v199_v30 }
 0x6b5   :  { %v246_v25 = vpop.eup %245 }
 0x6b6   :  { %v202_v26 = vmul.f32 %v246_v25, %v185_v24  ;;  %vm207_vm13 = vweird.f32 %v246_v25 }
 0x6b7   :  { %vm208_vm15 = vmor %vm206_vm14, %vm207_vm13 }
 0x6b8   :  { %v203_v27 = vsub.f32 1.0, %v202_v26 }
 0x6ba   :  { %v204_v28 = vmul.f32 %v246_v25, %v203_v27 }
 0x6bc   :  { %v205_v31 = vadd.f32 %v246_v25, %v204_v28 }
 0x6be   :  { %v209_v34 = vsel %vm208_vm15, %v246_v25, %v205_v31 }
 0x6bf   :  { %v214_v37 = vsel %vm211_vm0, %v213_v32, %v209_v34 }
 0x6c0   :  { %v215_v39 = vmul.f32 %v214_v37, %v200_v35 }
 0x6c2   :  { %v220_v41 = vmul.f32 %v219_v38, %v215_v39 }
 0x6c4   :  { %v221_v42 = vadd.f32 %v220_v41, %v217_v40 }
 0x6c6   :  { %223 = vst.msk [vmem:[%s430_s5] sm:$0xff] %vm222_vm1, %v221_v42 }
 0x6c7   :  { %228 = vsyncpa [#allocation4], 1 }
 0x6c8   :  { %229 = vsyncpa [#allocation6], 1 }
 0x6c9   :  { %230 = vsyncpa [#allocation9], 1 }

</bundles_post_ra>
